<compile_context>
chip_gen: v6e
topology: v6e:2x2x1
jax: 0.10.0
libtpu: 0.0.40
codegen_flags: <defaults>
</compile_context>

<pallas_src>
import numpy as np
import jax
import jax.numpy as jnp
from jax.experimental import pallas as pl
from jax.experimental.pallas import tpu as pltpu


def _round_up(x, m):
    return (x + m - 1) // m * m


def _pick_pixel_tile(p, cap):
    # largest multiple of 128 <= cap that divides p (p is a multiple of 128)
    t = min(p, cap)
    while p % t:
        t -= 128
    return t


# --------------------------------------------------------------------------
# Pallas kernel 1: per-pixel MPI generator (1x1 conv + sigmoid), stand-in for
# the (unspecified) MPIModule.  Channel-major, pixels on the lane axis.
# --------------------------------------------------------------------------
def _mpi_gen_kernel(x_ref, w_ref, b_ref, o_ref):
    x = x_ref[0]                                            # (Cin, ptile) f32
    acc = jnp.dot(w_ref[...], x, preferred_element_type=jnp.float32)
    o_ref[0] = jax.nn.sigmoid(acc + b_ref[...]).astype(o_ref.dtype)


def mpi_generator_pallas(feat, weight, bias, *, out_dtype=jnp.bfloat16,
                         max_ptile=2048):
    # feat: [b, Cin, P]  (P multiple of 128)
    # weight: [Cout, Cin]   bias: [Cout, 1]
    b, cin, p = feat.shape
    cout = weight.shape[0]
    assert p % 128 == 0
    ptile = _pick_pixel_tile(p, max_ptile)
    return pl.pallas_call(
        _mpi_gen_kernel,
        out_shape=jax.ShapeDtypeStruct((b, cout, p), out_dtype),
        grid_spec=pltpu.PrefetchScalarGridSpec(
            num_scalar_prefetch=0,
            grid=(b, p // ptile),
            in_specs=[
                pl.BlockSpec((1, cin, ptile), lambda bi, pi: (bi, 0, pi)),
                pl.BlockSpec((cout, cin), lambda bi, pi: (0, 0)),   # resident
                pl.BlockSpec((cout, 1), lambda bi, pi: (0, 0)),     # resident
            ],
            out_specs=pl.BlockSpec((1, cout, ptile), lambda bi, pi: (bi, 0, pi)),
        ),
        compiler_params=pltpu.CompilerParams(
            dimension_semantics=("parallel", "parallel"),
            vmem_limit_bytes=32 * 1024 * 1024),
    )(feat, weight, bias)


# --------------------------------------------------------------------------
# Pallas kernel 2: back-to-front over-compositing of MPI planes.
# Packed accumulator rows: [R, G, B, disp, acc_alpha, 0, 0, 0] -> every row is
# the same over-operator  acc = value*alpha + acc*(1-alpha)  (value=1 for the
# alpha row).  Accumulates directly in the resident output block.
# --------------------------------------------------------------------------
def _over_composite_kernel(pd_ref, mpi_ref, acc_ref):
    bi = pl.program_id(0)
    di = pl.program_id(2)

    @pl.when(di == 0)
    def _():
        acc_ref[...] = jnp.zeros_like(acc_ref)

    rgba = mpi_ref[0, 0].astype(jnp.float32)                # (4, ptile)
    alpha = rgba[3:4, :]                                    # (1, ptile)
    pt = rgba.shape[-1]
    dval = pd_ref[bi, di]                                   # scalar from SMEM
    vals = jnp.concatenate(
        [rgba[:3, :],
         jnp.full((1, pt), dval, jnp.float32),
         jnp.ones((1, pt), jnp.float32),
         jnp.zeros((3, pt), jnp.float32)],
        axis=0)                                             # (8, ptile)
    acc_ref[0] = vals * alpha + acc_ref[0] * (1.0 - alpha)


def over_composite_pallas(mpis, plane_disp, *, max_ptile=8192):
    # mpis: [b, D, 4, P] ordered back (far) -> front (near), P multiple of 128
    # plane_disp: [b, D] f32 per-plane disparity (scalar-prefetched into SMEM)
    b, d, c, p = mpis.shape
    assert c == 4 and p % 128 == 0
    ptile = _pick_pixel_tile(p, max_ptile)
    return pl.pallas_call(
        _over_composite_kernel,
        out_shape=jax.ShapeDtypeStruct((b, 8, p), jnp.float32),
        grid_spec=pltpu.PrefetchScalarGridSpec(
            num_scalar_prefetch=1,
            grid=(b, p // ptile, d),
            in_specs=[
                pl.BlockSpec((1, 1, 4, ptile),
                             lambda bi, pi, di, pd: (bi, di, 0, pi)),
            ],
            out_specs=pl.BlockSpec((1, 8, ptile),
                                   lambda bi, pi, di, pd: (bi, 0, pi)),
        ),
        compiler_params=pltpu.CompilerParams(
            dimension_semantics=("parallel", "parallel", "arbitrary"),
            vmem_limit_bytes=32 * 1024 * 1024),
    )(plane_disp, mpis)


# --------------------------------------------------------------------------
# Plain-JAX glue replicating the RenderNet helper methods.
# --------------------------------------------------------------------------
def divide_safe(num, den, eps=1e-8):
    return num / (den + (den == 0).astype(jnp.float32) * eps)


def get_disp_bounds(tgt_disp, near_depth, far_depth, upper_random,
                    safe_bound=1e-8):
    infty = 1e10
    max_disps = jnp.minimum(jnp.max(tgt_disp, axis=(1, 2)) * upper_random,
                            1.0 / safe_bound)
    min_disps = jnp.maximum(jnp.min(tgt_disp, axis=(1, 2)) * 0.5, 1.0 / infty)
    return min_disps, max_disps


def get_baseline(inv_exts):
    dt = inv_exts[:, 1:, :3, 3] - inv_exts[:, :1, :3, 3]
    dists = jnp.sqrt(jnp.sum(dt ** 2, axis=2))
    return jnp.mean(dists, axis=1)


def get_num_depths(baseline, focal_length, disp_range, h, w, num_rounding=16):
    req = np.asarray(baseline) * np.asarray(focal_length) * np.asarray(disp_range)
    im_size = h * w
    lower, upper = 16.0, (128.0 if im_size < 640 * 480 else 32.0)
    req = np.clip(req, lower, upper)
    return (req // num_rounding * num_rounding).astype(np.int32)


def projective_forward_warp_cm(rgba_cm, k_src, k_tgt, transforms, depths,
                               out_dtype=jnp.bfloat16):
    # rgba_cm: [b, 4, D, h, w] channel-major; k_src/k_tgt: [b,3,3]
    # transforms: [b,4,4]; depths: [D, b]
    # Returns warped planes as [b, D, 4, h, w] in `out_dtype` (compositor layout).
    b, _, D, h, w = rgba_cm.shape
    R = transforms[:, :3, :3]
    t = transforms[:, :3, 3]
    n = jnp.array([0.0, 0.0, 1.0], dtype=jnp.float32)
    tnT = jnp.einsum('bi,j->bij', t, n)
    k_src_inv = jnp.linalg.inv(k_src)
    M = R[None] - tnT[None] / depths[:, :, None, None]               # [D,b,3,3]
    H = jnp.einsum('bij,dbjk,bkl->dbil', k_tgt, M, k_src_inv)        # src->tgt
    H_inv = jnp.linalg.inv(H)                                        # tgt->src

    ys, xs = jnp.meshgrid(jnp.arange(h, dtype=jnp.float32),
                          jnp.arange(w, dtype=jnp.float32), indexing='ij')
    pix = jnp.stack([xs, ys, jnp.ones_like(xs)], axis=-1)            # [h,w,3]
    src = jnp.einsum('dbij,hwj->dbhwi', H_inv, pix)
    x_s = src[..., 0] / (src[..., 2] + 1e-12)                        # [D,b,h,w]
    y_s = src[..., 1] / (src[..., 2] + 1e-12)

    def sample_one(img, x, y):
        # img: [4, h, w] (bf16), x/y: [h, w]
        x0 = jnp.floor(x); y0 = jnp.floor(y)
        x1 = x0 + 1.0; y1 = y0 + 1.0
        wx = x - x0; wy = y - y0

        def gather(ix, iy):
            valid = ((ix >= 0) & (ix <= w - 1) & (iy >= 0) & (iy <= h - 1))
            ixc = jnp.clip(ix, 0, w - 1).astype(jnp.int32)
            iyc = jnp.clip(iy, 0, h - 1).astype(jnp.int32)
            vals = img[:, iyc, ixc].astype(jnp.float32)              # [4,h,w]
            return vals * valid[None].astype(jnp.float32)

        v00 = gather(x0, y0); v01 = gather(x1, y0)
        v10 = gather(x0, y1); v11 = gather(x1, y1)
        top = v00 * (1 - wx)[None] + v01 * wx[None]
        bot = v10 * (1 - wx)[None] + v11 * wx[None]
        return (top * (1 - wy)[None] + bot * wy[None]).astype(out_dtype)

    # TODO(synk): the bilinear gather of the homography warp stays in plain JAX;
    # a Pallas version needs manual data-dependent DMA gather.
    def per_batch(img_b, x_b, y_b):
        # img_b: [4, D, h, w]; x_b/y_b: [D, h, w] -> [D, 4, h, w]
        return jax.vmap(sample_one, in_axes=(1, 0, 0))(img_b, x_b, y_b)

    return jax.vmap(per_batch, in_axes=(0, 1, 1))(rgba_cm, x_s, y_s)  # [b,D,4,h,w]


# --------------------------------------------------------------------------
# RenderNet forward (mode='single_mpi')
# --------------------------------------------------------------------------
def render_net_forward(inputs, mode='single_mpi',
                       mpi_param_key=jax.random.PRNGKey(1)):
    (src_imgs, src_exts, inv_src_exts, src_ints, inv_src_ints,
     tgt_ext, tgt_int, bd, disps) = inputs
    b, v, c, h, w = src_imgs.shape

    # deterministic replacement for torch.rand(1).item()
    random_factor = float(jax.random.uniform(jax.random.PRNGKey(123), ()))
    upper_random = 1.0 + 0.1 * random_factor ** 2

    min_disps, max_disps = get_disp_bounds(disps[:, -1], bd[:, 0], bd[:, 1],
                                           upper_random)
    poses = jnp.concatenate([inv_src_exts, jnp.linalg.inv(tgt_ext)[:, None]], 1)
    baseline = get_baseline(poses)
    focal_length = tgt_int[:, 0, 0]
    disp_range = max_disps - min_disps
    num_depths = get_num_depths(baseline, focal_length, disp_range, h, w)

    # PyTorch stacks per-batch linspaces (requires equal counts) — use the
    # batch-min so the stack is well defined. (Host-side, mirroring .item()).
    D = int(np.min(num_depths))
    min_np, max_np = np.asarray(min_disps), np.asarray(max_disps)
    depth_cols = []
    for b_idx in range(b):
        far, near = float(min_np[b_idx]), float(max_np[b_idx])
        depth_cols.append(1.0 / np.linspace(far, near, D, dtype=np.float32))
    depths = jnp.asarray(np.stack(depth_cols, axis=1))               # [D, b]

    if mode != 'single_mpi':
        raise NotImplementedError('mpi mode [%s] is not implemented' % mode)

    # ---- MPI generation (Pallas, channel-major / pixel-lane-dense) ----
    # TODO(synk): MPIModule's architecture is not given in net.py; a
    # deterministic per-pixel 1x1-conv + sigmoid generator stands in for it.
    Cin, Cout = v * c, 4 * D
    wkey, _ = jax.random.split(mpi_param_key)
    W = jax.random.normal(wkey, (Cout, Cin), jnp.float32) * 0.5
    bias = jnp.zeros((Cout, 1), jnp.float32)

    P = h * w
    P_pad = _round_up(P, 128)
    feat = src_imgs.reshape(b, Cin, P)          # free: channels already major
    if P_pad != P:
        feat = jnp.pad(feat, ((0, 0), (0, 0), (0, P_pad - P)))
    mpi = mpi_generator_pallas(feat, W, bias)   # [b, 4*D, P_pad] bf16
    if P_pad != P:
        mpi = mpi[..., :P]
    mpi_cm = mpi.reshape(b, 4, D, h, w)         # free reshape, no transpose

    transforms = jnp.matmul(tgt_ext, inv_src_exts[:, 0])
    mpis = projective_forward_warp_cm(mpi_cm, src_ints[:, 0], tgt_int,
                                      transforms, depths)  # [b,D,4,h,w] bf16

    # ---- over-composite (Pallas) over the D depth planes ----
    mpis_k = mpis.reshape(b, D, 4, P)
    if P_pad != P:
        mpis_k = jnp.pad(mpis_k, ((0, 0), (0, 0), (0, 0), (0, P_pad - P)))
    plane_disp_bd = jnp.transpose(divide_safe(1.0, depths)).astype(jnp.float32)

    packed = over_composite_pallas(mpis_k, plane_disp_bd)   # [b, 8, P_pad] f32
    if P_pad != P:
        packed = packed[..., :P]
    rendering = packed[:, 0:3, :].reshape(b, 3, h, w)  # == permute(0,3,1,2)
    disp_map = packed[:, 3, :].reshape(b, h, w)
    acc_alpha = packed[:, 4, :].reshape(b, h, w)
    return rendering, acc_alpha, disp_map


if __name__ == "__main__":
    key = jax.random.PRNGKey(0)
    k_img, k_disp = jax.random.split(key)
    b, v, c, h, w = 2, 2, 3, 16, 16

    src_imgs = jax.random.uniform(k_img, (b, v, c, h, w), jnp.float32)

    f = 20.0
    K = jnp.array([[f, 0.0, w / 2.0],
                   [0.0, f, h / 2.0],
                   [0.0, 0.0, 1.0]], jnp.float32)
    src_ints = jnp.broadcast_to(K, (b, v, 3, 3))
    inv_src_ints = jnp.linalg.inv(src_ints)
    tgt_int = jnp.broadcast_to(K, (b, 3, 3))

    def make_ext(tx, ty, tz):
        E = jnp.eye(4, dtype=jnp.float32)
        return E.at[:3, 3].set(jnp.array([tx, ty, tz], jnp.float32))

    src_exts = jnp.stack([
        jnp.stack([make_ext(0.0, 0.0, 0.0), make_ext(0.2, 0.0, 0.0)]),
        jnp.stack([make_ext(0.0, 0.0, 0.0), make_ext(0.0, 0.2, 0.0)]),
    ])                                                   # [b, v, 4, 4]
    inv_src_exts = jnp.linalg.inv(src_exts)
    tgt_ext = jnp.stack([make_ext(0.1, 0.0, 0.0), make_ext(0.0, 0.1, 0.0)])

    bd = jnp.array([[1.0, 10.0], [1.0, 10.0]], jnp.float32)
    disps = jax.random.uniform(k_disp, (b, 1, h, w), jnp.float32,
                               minval=0.1, maxval=1.0)

    inputs = (src_imgs, src_exts, inv_src_exts, src_ints, inv_src_ints,
              tgt_ext, tgt_int, bd, disps)

    rendering, acc_alpha, disp_map = render_net_forward(inputs)
    jax.block_until_ready((rendering, acc_alpha, disp_map))
    assert rendering.shape == (b, 3, h, w)
    assert acc_alpha.shape == (b, h, w)
    assert disp_map.shape == (b, h, w)
    assert bool(jnp.all(jnp.isfinite(rendering)))
    assert bool(jnp.all(jnp.isfinite(acc_alpha)))
    assert bool(jnp.all(jnp.isfinite(disp_map)))
    print("KERNEL_OK")
</pallas_src>

<mosaic_0001>
module attributes {stable_mosaic.version = 11 : i64} {
  func.func @_mpi_gen_kernel(%arg0: i32, %arg1: i32, %arg2: memref<1x6x256xf32, #tpu.memory_space<vmem>>, %arg3: memref<64x6xf32, #tpu.memory_space<vmem>>, %arg4: memref<64x1xf32, #tpu.memory_space<vmem>>, %arg5: memref<1x64x256xbf16, #tpu.memory_space<vmem>>) attributes {dimension_semantics = [#tpu.dimension_semantics<parallel>, #tpu.dimension_semantics<parallel>], iteration_bounds = array<i64: 2, 1>, scalar_prefetch = 0 : i64, scratch_operands = 0 : i64, tpu.core_type = #tpu.core_type<tc>, window_params = [{transform_indices = @transform_0, window_bounds = array<i64: 1, 6, 256>}, {pipeline_mode = #tpu.pipeline_mode<synchronous>, transform_indices = @transform_1, window_bounds = array<i64: 64, 6>}, {pipeline_mode = #tpu.pipeline_mode<synchronous>, transform_indices = @transform_2, window_bounds = array<i64: 64, 1>}, {transform_indices = @transform_3, window_bounds = array<i64: 1, 64, 256>}]} {
    %c0 = arith.constant 0 : index
    %c0_0 = arith.constant 0 : index
    %c0_1 = arith.constant 0 : index
    %0 = vector.load %arg2[%c0, %c0_0, %c0_1] : memref<1x6x256xf32, #tpu.memory_space<vmem>>, vector<1x6x256xf32>
    %1 = vector.shape_cast %0 : vector<1x6x256xf32> to vector<6x256xf32>
    %c0_2 = arith.constant 0 : index
    %c0_3 = arith.constant 0 : index
    %2 = vector.load %arg3[%c0_2, %c0_3] : memref<64x6xf32, #tpu.memory_space<vmem>>, vector<64x6xf32>
    %cst = arith.constant dense<0.000000e+00> : vector<64x256xf32>
    %3 = tpu.matmul %2, %1, %cst {dimension_numbers = #tpu.dot_dimension_numbers<[1], [0], [0], [1], [0, 0, 1, 1], [], []>} : vector<64x6xf32>, vector<6x256xf32>, vector<64x256xf32> -> vector<64x256xf32>
    %c0_4 = arith.constant 0 : index
    %c0_5 = arith.constant 0 : index
    %4 = vector.load %arg4[%c0_4, %c0_5] : memref<64x1xf32, #tpu.memory_space<vmem>>, vector<64x1xf32>
    %5 = vector.broadcast %4 : vector<64x1xf32> to vector<64x256xf32>
    %6 = arith.addf %3, %5 : vector<64x256xf32>
    %7 = arith.negf %6 : vector<64x256xf32>
    %8 = math.exp %7 : vector<64x256xf32>
    %cst_6 = arith.constant 1.000000e+00 : f32
    %9 = vector.broadcast %cst_6 : f32 to vector<64x256xf32>
    %10 = arith.addf %9, %8 : vector<64x256xf32>
    %11 = arith.divf %9, %10 : vector<64x256xf32>
    %12 = arith.truncf %11 : vector<64x256xf32> to vector<64x256xbf16>
    %c0_7 = arith.constant 0 : index
    %c0_8 = arith.constant 0 : index
    %c0_9 = arith.constant 0 : index
    %13 = vector.load %arg5[%c0_7, %c0_8, %c0_9] : memref<1x64x256xbf16, #tpu.memory_space<vmem>>, vector<1x64x256xbf16>
    %14 = vector.shape_cast %13 : vector<1x64x256xbf16> to vector<64x256xbf16>
    %15 = vector.shape_cast %12 : vector<64x256xbf16> to vector<1x64x256xbf16>
    tpu.vector_store %arg5[%c0_7, %c0_8, %c0_9], %15 {strides = array<i32>} : memref<1x64x256xbf16, #tpu.memory_space<vmem>>, vector<1x64x256xbf16>,
    return
  }
  func.func @transform_0(%arg0: i32, %arg1: i32) -> (i32, i32, i32) {
    %c0_i32 = arith.constant 0 : i32
    %c0_i32_0 = arith.constant 0 : i32
    return %arg0, %c0_i32, %arg1 : i32, i32, i32
  }
  func.func @transform_1(%arg0: i32, %arg1: i32) -> (i32, i32) {
    %c0_i32 = arith.constant 0 : i32
    %c0_i32_0 = arith.constant 0 : i32
    %c0_i32_1 = arith.constant 0 : i32
    return %c0_i32, %c0_i32_0 : i32, i32
  }
  func.func @transform_2(%arg0: i32, %arg1: i32) -> (i32, i32) {
    %c0_i32 = arith.constant 0 : i32
    %c0_i32_0 = arith.constant 0 : i32
    %c0_i32_1 = arith.constant 0 : i32
    return %c0_i32, %c0_i32_0 : i32, i32
  }
  func.func @transform_3(%arg0: i32, %arg1: i32) -> (i32, i32, i32) {
    %c0_i32 = arith.constant 0 : i32
    %c0_i32_0 = arith.constant 0 : i32
    return %arg0, %c0_i32, %arg1 : i32, i32, i32
  }
}

</mosaic_0001>

<bundles_post_ra>
// kernel: tpu_custom_call.1
= control target key start
LH: loop header
LB: loop body
LE: loop exit
PB: predicated region body
PF: predicated region fallthrough
CT: control target
= control target key end

     0   :  { %8 = vsyncpa [#allocation3], 0  ;;  %s1111_s0 = inlined_call_operand.vmem [shape: f32[2,6,256], index: 0, kind: input, shape index: {}]   ;;  %s1112_s1 = inlined_call_operand.vmem [shape: f32[64,6], index: 1, kind: input, shape index: {}]   ;;  %s1113_s2 = inlined_call_operand.vmem [shape: f32[64,1], index: 2, kind: input, shape index: {}]   ;;  %s1114_s3 = inlined_call_operand.hbm [shape: bf16[2,64,256], index: 3, kind: output, shape index: {}]  }
   0x1   :  { %10 = vsyncpa [#allocation3 + $0x1], 0  ;;  %s937_s12 = smov 0   ;;  %s939_s13 = smov 0  }
   0x2   :  { %s941_s14 = smov 0   ;;  %s943_s15 = smov 0  }
   0x3   :  { %s945_s16 = smov 0   ;;  %s947_s17 = smov 0  }
   0x4 LB: > { %s650_s18 = sadd.s32 4294967295, %s910_s17   ;;  %s651_s19 = sadd.s32 4294967294, %s910_s17   ;;  %s910_s17 = sphi %s947_s17, %s16_s17   ;;  %s906_s16 = sphi %s945_s16, %s1121_s16   ;;  %s902_s15 = sphi %s943_s15, %s1120_s15   ;;  %s898_s14 = sphi %s941_s14, %s1119_s14   ;;  %s894_s13 = sphi %s939_s13, %s1118_s13   ;;  %s890_s12 = sphi %s937_s12, %s1117_s12  }
   0x5   : > { %s28_s20 = sadd.s32 1, %s906_s16  ;;  %s107_s21 = sadd.s32 1, %s898_s14 }
   0x6   : > { %p30_p0 = scmp.ge.s32.totalorder %s28_s20, 2  ;;  %p117_p1 = scmp.ne.s32.totalorder %s898_s14, %s894_s13 }
   0x7   : > { %p118_p2 = scmp.eq.s32.totalorder %s650_s18, 1  ;;  %p123_p3 = scmp.ne.s32.totalorder %s894_s13, %s890_s12 }
   0x8   : > { %s1123_s20 = smov (%p30_p0, %s28_s20), 0  ;;  %p124_p5 = scmp.eq.s32.totalorder %s651_s19, 1 }
   0x9   : > { %p977_p4 = por %p118_p2, %p117_p1  ;;  %s102_s23 = ssub.s32 %s906_s16, %s1123_s20 }
   0xa   : > { %p654_p6 = scmp.ge.s32.totalorder %s910_s17, 1  ;;  %p105_p7 = scmp.eq.s32.totalorder %s102_s23, 0 }
   0xb   : > { %p984_p8 = por %p124_p5, %p123_p3  ;;  %p161_p9 = scmp.lt.s32.totalorder %s910_s17, 3 }
   0xc   : > { %s990_s25 = scalar_select %p105_p7, %s898_s14, %s107_s21  }
   0xd   : > { %p162_p10 = pnand %p654_p6, %p161_p9 }
   0xe   : > { %p190_p11 = scmp.lt.s32.totalorder (!%p162_p10), %s902_s15, 1  ;;  %s186_s29 = sand.u32 (!%p162_p10), 1, %s894_s13  }
   0xf   : > { %165 = sbr.rel (%p162_p10) target bundleno = 285 (0x11d), region = 32  ;;  %s655_s30 = sshll.u32 (!%p162_p10), %s186_s29, 6 }
  0x10   : > { %s706_s5 = sshll.u32 (!%p162_p10), %s902_s15, 10  ;;  %s914_s11 = smov (!%p162_p10), [#allocation2]  }
  0x11   : > { %s1060_s9 = scalar_lea.hbm (!%p162_p10), %s1114_s3, %s706_s5  ;;  %s838_s18 = sshll.u32 (!%p162_p10), %s914_s11, 4  ;;  %s839_s18 = int_to_ptr.vmem [resolvable:$false] %s838_s18 }
  0x12   : > { %s840_s19 = scalar_lea.vmem (!%p162_p10), %s839_s18, 2048 }
  0x14   : > { %v912_v0 = vmov 0.0   ;;  %s191_s26 = scalar_select %p190_p11, %s902_s15, 1  ;;  %v913_v1 = vmov 0   ;;  %v212_v2 = vld [vmem:[%s1113_s2 + $0x10] sm:$0xff]  ;;  %v210_v3 = vld [vmem:[%s1113_s2] sm:$0xff]  ;;  %vm283_vm0 = vcmask 1045504  }
  0x15   : > { %354 = vmatprep.mubr.f32.mxu0 %v912_v0  ;;  %378 = vmatprep.mubr.f32.mxu1 %v912_v0  ;;  %v202_v4 = vld [vmem:[%s1112_s1] sm:$0xff]  ;;  %vm258_vm1 = vcmask 48128   ;;  %v213_v8 = vld [vmem:[%s1113_s2 + $0x18] sm:$0xff]  ;;  %v211_v9 = vld [vmem:[%s1113_s2 + $0x8] sm:$0xff]  ;;  %s1066_s15 = scalar_lea.sflag [#allocation3], %s186_s29 }
  0x16   : > { %769 = vset.pattern.permute.xlu1 %v913_v1  ;;  %768 = vset.pattern.permute.xlu0 %v913_v1  ;;  %s697_s4 = sshll.u32 %s191_s26, 4  ;;  %v206_v7 = vld [vmem:[%s1112_s1 + $0x20] sm:$0xff]  ;;  %v203_v10 = vld [vmem:[%s1112_s1 + $0x8] sm:$0xff]  ;;  %v204_v14 = vld [vmem:[%s1112_s1 + $0x10] sm:$0xff] }
  0x17   : > { %230 = vperm.xlu1 %769, %v212_v2   ;;  %220 = vperm.xlu0 %768, %v210_v3   ;;  %s197_s7 = scalar_lea.vmem %s1111_s0, %s697_s4  ;;  %v207_v11 = vld [vmem:[%s1112_s1 + $0x28] sm:$0xff]  ;;  %v214_v13 = vld [vmem:[%s1113_s2 + $0x20] sm:$0xff]  ;;  %v208_v15 = vld [vmem:[%s1112_s1 + $0x30] sm:$0xff]  ;;  %s188_s4 = scalar_lea.vmem [#allocation2], %s655_s30 }
  0x18   : > { %v201_v5 = vld [vmem:[%s197_s7 + $0x8] sm:$0x3f]  ;;  %v200_v6 = vld [vmem:[%s197_s7] sm:$0x3f]  ;;  %v217_v16 = vld [vmem:[%s1113_s2 + $0x38] sm:$0xff]  ;;  %s571_s6 = sshll.u32 %s188_s4, 4  ;;  %s1062_s6 = int_to_ptr.vmem [resolvable:$true] %s571_s6 }
  0x19   : > { %658 = vmatprep.subr.msk.mxu0 %vm283_vm0, %v201_v5  ;;  %707 = vmatprep.subr.msk.mxu1 %vm283_vm0, %v201_v5  ;;  %v215_v12 = vld [vmem:[%s1113_s2 + $0x28] sm:$0xff]  ;;  %v216_v17 = vld [vmem:[%s1113_s2 + $0x30] sm:$0xff]  ;;  %v205_v18 = vld [vmem:[%s1112_s1 + $0x18] sm:$0xff]  ;;  %s834_s10 = scalar_lea.vmem %s1062_s6, 1024  ;;  %p841_p1 = scmp.lt.s32.totalorder %s1062_s6, %s839_s18 }
  0x1a   : > { %659 = vmatpush1.msk.msra.mxu0 %vm283_vm0, %v200_v6  ;;  %708 = vmatpush1.msk.msra.mxu1 %vm283_vm0, %v200_v6  ;;  %v209_v19 = vld [vmem:[%s1112_s1 + $0x38] sm:$0xff]  ;;  %p835_p12 = scmp.ne.s32.totalorder %s1062_s6, %s834_s10  ;;  %p842_p2 = scmp.lt.s32.totalorder %s840_s19, %s834_s10 }
  0x1b   : > { %660 = vmatmul.mubr.msk.f32.vlgmr.msra.gmra.mxu0 %vm258_vm1, %v202_v4  ;;  %664 = vmatmul.mubr.msk.f32.vlgmr.msra.gmra.mxu1 %vm258_vm1, %v206_v7 }
  0x1c   : > { %360 = vmatprep.mubr.f32.mxu0 %v912_v0  ;;  %384 = vmatprep.mubr.f32.mxu1 %v912_v0  ;;  %p836_p13 = pnand %p835_p12, %p977_p4  ;;  %p843_p3 = por %p842_p2, %p841_p1 }
  0x1d   : > { %235 = vperm.xlu1 %769, %v213_v8   ;;  %225 = vperm.xlu0 %768, %v211_v9  }
  0x1e   : > { %p837_p0 = pneg %p836_p13 }
  0x1f   : > { %661 = vmatmul.mubr.msk.f32.gmra.mxu0 %vm258_vm1, %v203_v10  ;;  %665 = vmatmul.mubr.msk.f32.gmra.mxu1 %vm258_vm1, %v207_v11 }
  0x20   : > { %366 = vmatprep.mubr.f32.mxu0 %v912_v0  ;;  %390 = vmatprep.mubr.f32.mxu1 %v912_v0  ;;  %p844_p5 = pnand %p843_p3, %p837_p0 }
  0x21   : > { %245 = vperm.xlu1 %769, %v215_v12   ;;  %240 = vperm.xlu0 %768, %v214_v13  }
  0x23   : > { %662 = vmatmul.mubr.msk.f32.gmra.mxu0 %vm258_vm1, %v204_v14  ;;  %666 = vmatmul.mubr.msk.f32.gmra.mxu1 %vm258_vm1, %v208_v15 }
  0x24   : > { %372 = vmatprep.mubr.f32.mxu0 %v912_v0  ;;  %396 = vmatprep.mubr.f32.mxu1 %v912_v0 }
  0x25   : > { %255 = vperm.xlu1 %769, %v217_v16   ;;  %250 = vperm.xlu0 %768, %v216_v17  }
  0x27   : > { %663 = vmatmul.mubr.msk.f32.gmra.mxu0 %vm258_vm1, %v205_v18  ;;  %667 = vmatmul.mubr.msk.f32.gmra.mxu1 %vm258_vm1, %v209_v19 }
  0x92   : > { %v221_v20 = vpop.permute.xlu0 %220  ;;  %v231_v21 = vpop.permute.xlu1 %230 }
  0x98   : > { %v226_v22 = vpop.permute.xlu0 %225  ;;  %v236_v23 = vpop.permute.xlu1 %235 }
  0x9c   : > { %v241_v24 = vpop.permute.xlu0 %240  ;;  %v246_v37 = vpop.permute.xlu1 %245 }
  0xa0   : > { %v251_v50 = vpop.permute.xlu0 %250  ;;  %v256_v63 = vpop.permute.xlu1 %255 }
  0xdb   : > { %v356_v25 = vpop.f32.mrf.mxu0  ;;  %v380_v26 = vpop.f32.mrf.mxu1 }
  0xdc   : > { %v357_v27 = vadd.f32 %v356_v25, %v221_v20  ;;  %v381_v28 = vadd.f32 %v380_v26, %v241_v24 }
  0xdd   : > { %v358_v29 = vpop.f32.mrf.mxu0  ;;  %v382_v30 = vpop.f32.mrf.mxu1 }
  0xde   : > { %v668_v31 = vmul.f32 -1.442695, %v357_v27  ;;  %v676_v32 = vmul.f32 -1.442695, %v381_v28  ;;  %v359_v33 = vadd.f32 %v358_v29, %v221_v20  ;;  %v383_v34 = vadd.f32 %v382_v30, %v241_v24 }
  0xdf   : > { %v362_v35 = vpop.f32.mrf.mxu0  ;;  %v386_v36 = vpop.f32.mrf.mxu1 }
  0xe0   : > { %770 = vpow2.f32 %v668_v31  ;;  %v669_v38 = vmul.f32 -1.442695, %v359_v33  ;;  %v677_v39 = vmul.f32 -1.442695, %v383_v34  ;;  %v363_v40 = vadd.f32 %v362_v35, %v226_v22 }
  0xe1   : > { %772 = vpow2.f32 %v676_v32  ;;  %v387_v41 = vadd.f32 %v386_v36, %v246_v37  ;;  %v364_v42 = vpop.f32.mrf.mxu0  ;;  %v388_v43 = vpop.f32.mrf.mxu1 }
  0xe2   : > { %774 = vpow2.f32 %v669_v38  ;;  %v670_v44 = vmul.f32 -1.442695, %v363_v40  ;;  %v365_v45 = vadd.f32 %v364_v42, %v226_v22  ;;  %v389_v46 = vadd.f32 %v388_v43, %v246_v37 }
  0xe3   : > { %776 = vpow2.f32 %v677_v39  ;;  %v678_v47 = vmul.f32 -1.442695, %v387_v41  ;;  %v368_v48 = vpop.f32.mrf.mxu0  ;;  %v392_v49 = vpop.f32.mrf.mxu1 }
  0xe4   : > { %778 = vpow2.f32 %v670_v44  ;;  %v671_v51 = vmul.f32 -1.442695, %v365_v45  ;;  %v679_v52 = vmul.f32 -1.442695, %v389_v46  ;;  %v369_v53 = vadd.f32 %v368_v48, %v231_v21 }
  0xe5   : > { %780 = vpow2.f32 %v678_v47  ;;  %v393_v54 = vadd.f32 %v392_v49, %v251_v50  ;;  %v370_v55 = vpop.f32.mrf.mxu0  ;;  %v394_v56 = vpop.f32.mrf.mxu1 }
  0xe6   : > { %782 = vpow2.f32 %v671_v51  ;;  %v672_v57 = vmul.f32 -1.442695, %v369_v53  ;;  %v371_v58 = vadd.f32 %v370_v55, %v231_v21  ;;  %v395_v59 = vadd.f32 %v394_v56, %v251_v50 }
  0xe7   : > { %784 = vpow2.f32 %v679_v52  ;;  %v680_v60 = vmul.f32 -1.442695, %v393_v54  ;;  %v374_v61 = vpop.f32.mrf.mxu0  ;;  %v398_v62 = vpop.f32.mrf.mxu1 }
  0xe8   : > { %786 = vpow2.f32 %v672_v57  ;;  %v673_v0 = vmul.f32 -1.442695, %v371_v58  ;;  %v681_v1 = vmul.f32 -1.442695, %v395_v59  ;;  %v375_v2 = vadd.f32 %v374_v61, %v236_v23 }
  0xe9   : > { %788 = vpow2.f32 %v680_v60  ;;  %v399_v3 = vadd.f32 %v398_v62, %v256_v63  ;;  %v376_v4 = vpop.f32.mrf.mxu0  ;;  %v400_v5 = vpop.f32.mrf.mxu1 }
  0xea   : > { %790 = vpow2.f32 %v673_v0  ;;  %v674_v6 = vmul.f32 -1.442695, %v375_v2  ;;  %v377_v7 = vadd.f32 %v376_v4, %v236_v23  ;;  %v401_v8 = vadd.f32 %v400_v5, %v256_v63 }
  0xeb   : > { %792 = vpow2.f32 %v681_v1  ;;  %v682_v9 = vmul.f32 -1.442695, %v399_v3 }
  0xec   : > { %794 = vpow2.f32 %v674_v6  ;;  %v675_v10 = vmul.f32 -1.442695, %v377_v7  ;;  %v683_v11 = vmul.f32 -1.442695, %v401_v8 }
  0xed   : > { %v771_v12 = vpop.eup %770  ;;  %796 = vpow2.f32 %v682_v9 }
  0xee   : > { %v773_v13 = vpop.eup %772  ;;  %v451_v14 = vadd.f32 1.0, %v771_v12  ;;  %798 = vpow2.f32 %v675_v10 }
  0xef   : > { %v775_v15 = vpop.eup %774  ;;  %v459_v16 = vadd.f32 1.0, %v773_v13  ;;  %800 = vpow2.f32 %v683_v11 }
  0xf0   : > { %v777_v17 = vpop.eup %776  ;;  %802 = vrcp.f32 %v451_v14  ;;  %v452_v18 = vadd.f32 1.0, %v775_v15 }
  0xf1   : > { %v779_v19 = vpop.eup %778  ;;  %804 = vrcp.f32 %v459_v16  ;;  %v460_v20 = vadd.f32 1.0, %v777_v17 }
  0xf2   : > { %v781_v21 = vpop.eup %780  ;;  %806 = vrcp.f32 %v452_v18  ;;  %v453_v22 = vadd.f32 1.0, %v779_v19 }
  0xf3   : > { %v783_v23 = vpop.eup %782  ;;  %808 = vrcp.f32 %v460_v20  ;;  %v461_v24 = vadd.f32 1.0, %v781_v21 }
  0xf4   : > { %v785_v25 = vpop.eup %784  ;;  %810 = vrcp.f32 %v453_v22  ;;  %v454_v26 = vadd.f32 1.0, %v783_v23 }
  0xf5   : > { %v787_v27 = vpop.eup %786  ;;  %812 = vrcp.f32 %v461_v24  ;;  %v462_v28 = vadd.f32 1.0, %v785_v25 }
  0xf6   : > { %v789_v29 = vpop.eup %788  ;;  %814 = vrcp.f32 %v454_v26  ;;  %v455_v30 = vadd.f32 1.0, %v787_v27 }
  0xf7   : > { %v791_v31 = vpop.eup %790  ;;  %816 = vrcp.f32 %v462_v28  ;;  %v463_v32 = vadd.f32 1.0, %v789_v29 }
  0xf8   : > { %v793_v33 = vpop.eup %792  ;;  %818 = vrcp.f32 %v455_v30  ;;  %v456_v34 = vadd.f32 1.0, %v791_v31 }
  0xf9   : > { %v795_v35 = vpop.eup %794  ;;  %820 = vrcp.f32 %v463_v32  ;;  %v464_v36 = vadd.f32 1.0, %v793_v33 }
  0xfa   : > { %v797_v37 = vpop.eup %796  ;;  %822 = vrcp.f32 %v456_v34  ;;  %v457_v38 = vadd.f32 1.0, %v795_v35 }
  0xfb   : > { %v799_v39 = vpop.eup %798  ;;  %824 = vrcp.f32 %v464_v36  ;;  %v465_v40 = vadd.f32 1.0, %v797_v37 }
  0xfc   : > { %v801_v41 = vpop.eup %800  ;;  %826 = vrcp.f32 %v457_v38  ;;  %v458_v42 = vadd.f32 1.0, %v799_v39 }
  0xfd   : > { %v803_v43 = vpop.eup %802  ;;  %828 = vrcp.f32 %v465_v40  ;;  %v466_v44 = vadd.f32 1.0, %v801_v41 }
  0xfe   : > { %v805_v45 = vpop.eup %804  ;;  %830 = vrcp.f32 %v458_v42 }
  0xff   : > { %v807_v46 = vpop.eup %806  ;;  %832 = vrcp.f32 %v466_v44 }
 0x100   : > { %v809_v47 = vpop.eup %808  ;;  %v698_v48 = vpack.c.bf16 %v807_v46, %v803_v43 }
 0x101   : > { %v811_v49 = vpop.eup %810  ;;  %v702_v50 = vpack.c.bf16 %v809_v47, %v805_v45 }
 0x102   : > { %v813_v51 = vpop.eup %812  ;;  %547 = vst [vmem:[%s188_s4] sm:$0xff] %v698_v48 }
 0x103   : > { %v815_v52 = vpop.eup %814  ;;  %551 = vst [vmem:[%s188_s4 + $0x20] sm:$0xff] %v702_v50 }
 0x104   : > { %v817_v53 = vpop.eup %816  ;;  %v699_v54 = vpack.c.bf16 %v815_v52, %v811_v49 }
 0x105   : > { %v819_v55 = vpop.eup %818  ;;  %v703_v56 = vpack.c.bf16 %v817_v53, %v813_v51 }
 0x106   : > { %v821_v57 = vpop.eup %820  ;;  %548 = vst [vmem:[%s188_s4 + $0x8] sm:$0xff] %v699_v54 }
 0x107   : > { %v823_v58 = vpop.eup %822  ;;  %552 = vst [vmem:[%s188_s4 + $0x28] sm:$0xff] %v703_v56 }
 0x108   : > { %v825_v59 = vpop.eup %824  ;;  %v700_v60 = vpack.c.bf16 %v823_v58, %v819_v55 }
 0x109   : > { %v827_v61 = vpop.eup %826  ;;  %v704_v62 = vpack.c.bf16 %v825_v59, %v821_v57 }
 0x10a   : > { %v829_v63 = vpop.eup %828  ;;  %549 = vst [vmem:[%s188_s4 + $0x10] sm:$0xff] %v700_v60 }
 0x10b   : > { %v831_v0 = vpop.eup %830  ;;  %553 = vst [vmem:[%s188_s4 + $0x30] sm:$0xff] %v704_v62 }
 0x10c   : > { %v833_v1 = vpop.eup %832  ;;  %v701_v2 = vpack.c.bf16 %v831_v0, %v827_v61 }
 0x10d   : > { %v705_v3 = vpack.c.bf16 %v833_v1, %v829_v63 }
 0x10e   : > { %550 = vst [vmem:[%s188_s4 + $0x18] sm:$0xff] %v701_v2 }
 0x10f   : > { %554 = vst [vmem:[%s188_s4 + $0x38] sm:$0xff] %v705_v3 }
 0x110   : > { %847 = shalt.err (!%p844_p5)
}
 0x111   : > { %s848_s21 = scalar_lea.hbm %s1060_s9, 1024  ;;  %s852_s27 = scalar_lea.hbm %s1114_s3, 2048 }
 0x112   : > { %p849_p6 = scmp.ne.s32.totalorder %s1060_s9, %s848_s21  ;;  %p853_p10 = scmp.lt.s32.totalorder %s1060_s9, %s1114_s3 }
 0x113   : > { %p854_p11 = scmp.lt.s32.totalorder %s852_s27, %s848_s21 }
 0x114   : > { %p850_p7 = pnand %p849_p6, %p977_p4 }
 0x115   : > { %p855_p12 = por %p854_p11, %p853_p10 }
 0x116   : > { %p851_p9 = pneg %p850_p7 }
 0x118   : > { %p856_p13 = pnand %p855_p12, %p851_p9 }
 0x11a   : > { %859 = shalt.err (!%p856_p13)
}
 0x11b   : > { %s915_s30 = smov 128   ;;  %s916_s4 = smov 8  }
 0x11c   : > { %709 = dma.vmem_to_hbm [thread:$0]  (%p977_p4), %s1062_s6, 1024, %s1060_s9, %s1066_s15, %s915_s30, %s915_s30, %s916_s4  }
 0x11d PF: > { %p715_p0 = scmp.ge.s32.totalorder %s910_s17, 2  ;;  %s586_s5 = sand.u32 1, %s890_s12  }
 0x11e   : > { %s587_s7 = scalar_lea.sflag [#allocation3], %s586_s5 }
 0x11f   : > { %p712_p1 = pnand %p715_p0, %p984_p8 }
 0x121   : > { %p713_p2 = pneg %p712_p1 }
 0x123   : > { %885 = dma.done.wait (%p713_p2), %s587_s7, 1024  }
 0x124   : > { %887 = vsyncadd (%p713_p2), %s587_s7, 4294966272  ;;  %s16_s17 = sadd.s32 1, %s910_s17   ;;  %s1117_s12 = smov %s894_s13 }
 0x125   : > { %p13_p3 = scmp.ge.s32.totalorder %s16_s17, 4   ;;  %s1118_s13 = smov %s898_s14 }
 0x126   : > { %s1119_s14 = smov %s990_s25  ;;  %s1120_s15 = smov %s906_s16 }
 0x127   : > { %s1121_s16 = smov %s1123_s20  ;;  %15 = sbr.rel (!%p13_p3) target bundleno = 4 (0x4), region = 67 }
 0x12c   :  { %592 = vsyncpa [#allocation3], 1 }
 0x12d   :  { %594 = vsyncpa [#allocation3 + $0x1], 1 }

</bundles_post_ra>
